<compile_context>
chip_gen: v6e
topology: v6e:2x2x1
jax: 0.10.0
libtpu: 0.0.40
codegen_flags: <defaults>
</compile_context>

<pallas_src>
import functools

import jax
import jax.numpy as jnp
from jax import lax
from jax.experimental import pallas as pl
from jax.experimental.pallas import tpu as pltpu


def _prenorm_ffn_kernel(x_ref, g_ref, beta_ref, w1_ref, b1_ref, w2_ref, b2_ref,
                        o_ref, *, eps):
    # x_ref:  (TILE_T, D) token tile (f32)
    # g_ref/beta_ref: (1, D) LayerNorm affine params (f32)
    # w1_ref: (D, H) bf16, b1_ref: (1, H) f32
    # w2_ref: (H, D) bf16, b2_ref: (1, D) f32
    x = x_ref[...].astype(jnp.float32)

    # ---- LayerNorm over the embedding dim (f32, biased variance, like torch) ----
    mean = jnp.mean(x, axis=-1, keepdims=True)
    xc = x - mean
    var = jnp.mean(xc * xc, axis=-1, keepdims=True)
    xn = xc * lax.rsqrt(var + eps)
    xn = xn * g_ref[...] + beta_ref[...]                      # (TILE_T, D) f32

    # ---- fn = FeedForward: Linear -> GELU -> Linear (MXU in bf16, f32 acc) ----
    h = jnp.dot(xn.astype(w1_ref.dtype), w1_ref[...],
                preferred_element_type=jnp.float32) + b1_ref[...]
    h = jax.nn.gelu(h)                                        # f32 (EUP tanh path)
    y = jnp.dot(h.astype(w2_ref.dtype), w2_ref[...],
                preferred_element_type=jnp.float32) + b2_ref[...]
    o_ref[...] = y.astype(o_ref.dtype)


def prenorm_ffn(x, gamma, beta, w1, b1, w2, b2, *, eps=1e-5, tile_t=256,
                param_dtype=jnp.bfloat16):
    """out = FFN(LayerNorm(x)), fused in one token-tiled Pallas kernel.

    x : (B, N, D) float32
    """
    B, N, D = x.shape
    H = w1.shape[1]
    T = B * N

    # token tile: multiple of 8 sublanes, capped at T
    tile_t = max(8, min(tile_t, T))
    tile_t = ((tile_t + 7) // 8) * 8
    grid_t = pl.cdiv(T, tile_t)
    T_pad = grid_t * tile_t

    x2d = x.reshape(T, D)
    if T_pad != T:
        x2d = jnp.pad(x2d, ((0, T_pad - T), (0, 0)))  # pad rows are LN-safe (eps)

    # bf16 weights for the MXU; f32 biases / LN params for VPU/EUP math.
    w1c = w1.astype(param_dtype)
    w2c = w2.astype(param_dtype)
    g2d = gamma.reshape(1, D).astype(jnp.float32)
    be2d = beta.reshape(1, D).astype(jnp.float32)
    b1_2d = b1.reshape(1, H).astype(jnp.float32)
    b2_2d = b2.reshape(1, D).astype(jnp.float32)

    # ---- VMEM budget: resident weights + double-buffered x/out tiles ----
    itemsize_w = jnp.dtype(param_dtype).itemsize
    bytes_weights = (D * H + H * D) * itemsize_w + (3 * D + H) * 4
    bytes_tiles = 2 * 2 * (tile_t * D * 4)          # x + out, double-buffered
    bytes_inter = 2 * tile_t * H * 4                # (TILE_T, H) intermediates
    vmem_est = 2 * bytes_weights + bytes_tiles + bytes_inter
    vmem_limit = int(min(60 * 2**20, max(32 * 2**20, 2 * vmem_est)))

    cost = pl.CostEstimate(
        flops=4 * T * D * H + 10 * T * D,
        transcendentals=T * H + T,
        bytes_accessed=2 * T * D * 4 + bytes_weights,
    )

    kernel = functools.partial(_prenorm_ffn_kernel, eps=eps)

    out2d = pl.pallas_call(
        kernel,
        out_shape=jax.ShapeDtypeStruct((T_pad, D), x.dtype),
        grid_spec=pltpu.PrefetchScalarGridSpec(
            num_scalar_prefetch=0,
            grid=(grid_t,),
            in_specs=[
                pl.BlockSpec((tile_t, D), lambda i: (i, 0)),   # x tile (streamed)
                pl.BlockSpec((1, D), lambda i: (0, 0)),        # gamma (resident)
                pl.BlockSpec((1, D), lambda i: (0, 0)),        # beta
                pl.BlockSpec((D, H), lambda i: (0, 0)),        # w1
                pl.BlockSpec((1, H), lambda i: (0, 0)),        # b1
                pl.BlockSpec((H, D), lambda i: (0, 0)),        # w2
                pl.BlockSpec((1, D), lambda i: (0, 0)),        # b2
            ],
            out_specs=pl.BlockSpec((tile_t, D), lambda i: (i, 0)),
        ),
        compiler_params=pltpu.CompilerParams(
            dimension_semantics=("parallel",),   # token tiles are independent
            vmem_limit_bytes=vmem_limit,
        ),
        cost_estimate=cost,
    )(x2d, g2d, be2d, w1c, b1_2d, w2c, b2_2d)

    if T_pad != T:
        out2d = out2d[:T]
    return out2d.reshape(B, N, D)


def reference(x, gamma, beta, w1, b1, w2, b2, eps=1e-5):
    # plain-JAX f32 reference of PreNorm(FeedForward)(x)
    mean = jnp.mean(x, axis=-1, keepdims=True)
    var = jnp.mean((x - mean) ** 2, axis=-1, keepdims=True)
    xn = (x - mean) * lax.rsqrt(var + eps) * gamma + beta
    h = jax.nn.gelu(xn @ w1 + b1)
    return h @ w2 + b2


if __name__ == "__main__":
    key = jax.random.PRNGKey(0)
    # lane-dense demo dims: D, H multiples of 128; TILE_T=64 -> grid=(2,)
    B, N, D, H = 2, 64, 128, 256

    kx, kg, kb, k1, k2, k3, k4 = jax.random.split(key, 7)
    x = jax.random.normal(kx, (B, N, D), dtype=jnp.float32)
    # deterministic parameter init (synthetic; not loaded from a checkpoint)
    gamma = 1.0 + 0.1 * jax.random.normal(kg, (D,), dtype=jnp.float32)
    beta = 0.1 * jax.random.normal(kb, (D,), dtype=jnp.float32)
    w1 = jax.random.normal(k1, (D, H), dtype=jnp.float32) * 0.05
    b1 = jax.random.normal(k2, (H,), dtype=jnp.float32) * 0.01
    w2 = jax.random.normal(k3, (H, D), dtype=jnp.float32) * 0.05
    b2 = jax.random.normal(k4, (D,), dtype=jnp.float32) * 0.01

    out = prenorm_ffn(x, gamma, beta, w1, b1, w2, b2, tile_t=64)
    jax.block_until_ready(out)

    ref = reference(x, gamma, beta, w1, b1, w2, b2)
    assert out.shape == x.shape
    max_err = float(jnp.max(jnp.abs(out - ref)))
    # bf16 MXU operands (f32 accumulation) vs. f32 reference -> ~1e-2 tolerance
    assert jnp.allclose(out, ref, atol=3e-2, rtol=3e-2), max_err

    print("KERNEL_OK")
</pallas_src>

<mosaic_0001>
module attributes {stable_mosaic.version = 11 : i64} {
  func.func @_prenorm_ffn_kernel(%arg0: i32, %arg1: memref<64x128xf32, #tpu.memory_space<vmem>>, %arg2: memref<1x128xf32, #tpu.memory_space<vmem>>, %arg3: memref<1x128xf32, #tpu.memory_space<vmem>>, %arg4: memref<128x256xbf16, #tpu.memory_space<vmem>>, %arg5: memref<1x256xf32, #tpu.memory_space<vmem>>, %arg6: memref<256x128xbf16, #tpu.memory_space<vmem>>, %arg7: memref<1x128xf32, #tpu.memory_space<vmem>>, %arg8: memref<64x128xf32, #tpu.memory_space<vmem>>) attributes {dimension_semantics = [#tpu.dimension_semantics<parallel>], iteration_bounds = array<i64: 2>, scalar_prefetch = 0 : i64, scratch_operands = 0 : i64, tpu.core_type = #tpu.core_type<tc>, window_params = [{transform_indices = @transform_0, window_bounds = array<i64: 64, 128>}, {pipeline_mode = #tpu.pipeline_mode<synchronous>, transform_indices = @transform_1, window_bounds = array<i64: 1, 128>}, {pipeline_mode = #tpu.pipeline_mode<synchronous>, transform_indices = @transform_2, window_bounds = array<i64: 1, 128>}, {pipeline_mode = #tpu.pipeline_mode<synchronous>, transform_indices = @transform_3, window_bounds = array<i64: 128, 256>}, {pipeline_mode = #tpu.pipeline_mode<synchronous>, transform_indices = @transform_4, window_bounds = array<i64: 1, 256>}, {pipeline_mode = #tpu.pipeline_mode<synchronous>, transform_indices = @transform_5, window_bounds = array<i64: 256, 128>}, {pipeline_mode = #tpu.pipeline_mode<synchronous>, transform_indices = @transform_6, window_bounds = array<i64: 1, 128>}, {transform_indices = @transform_7, window_bounds = array<i64: 64, 128>}]} {
    %c0 = arith.constant 0 : index
    %c0_0 = arith.constant 0 : index
    %0 = vector.load %arg1[%c0, %c0_0] : memref<64x128xf32, #tpu.memory_space<vmem>>, vector<64x128xf32>
    %cst = arith.constant dense<0.000000e+00> : vector<64xf32>
    %1 = vector.multi_reduction <add>, %0, %cst [1] : vector<64x128xf32> to vector<64xf32>
    %2 = vector.shape_cast %1 : vector<64xf32> to vector<64x1xf32>
    %cst_1 = arith.constant 1.280000e+02 : f32
    %3 = vector.broadcast %cst_1 : f32 to vector<64x1xf32>
    %4 = arith.divf %2, %3 : vector<64x1xf32>
    %5 = vector.broadcast %4 : vector<64x1xf32> to vector<64x128xf32>
    %6 = arith.subf %0, %5 : vector<64x128xf32>
    %7 = arith.mulf %6, %6 : vector<64x128xf32>
    %cst_2 = arith.constant dense<0.000000e+00> : vector<64xf32>
    %8 = vector.multi_reduction <add>, %7, %cst_2 [1] : vector<64x128xf32> to vector<64xf32>
    %9 = vector.shape_cast %8 : vector<64xf32> to vector<64x1xf32>
    %cst_3 = arith.constant 1.280000e+02 : f32
    %10 = vector.broadcast %cst_3 : f32 to vector<64x1xf32>
    %11 = arith.divf %9, %10 : vector<64x1xf32>
    %cst_4 = arith.constant 9.99999974E-6 : f32
    %12 = vector.broadcast %cst_4 : f32 to vector<64x1xf32>
    %13 = arith.addf %11, %12 : vector<64x1xf32>
    %14 = math.rsqrt %13 : vector<64x1xf32>
    %15 = vector.broadcast %14 : vector<64x1xf32> to vector<64x128xf32>
    %16 = arith.mulf %6, %15 : vector<64x128xf32>
    %c0_5 = arith.constant 0 : index
    %c0_6 = arith.constant 0 : index
    %17 = vector.load %arg2[%c0_5, %c0_6] : memref<1x128xf32, #tpu.memory_space<vmem>>, vector<1x128xf32>
    %18 = vector.broadcast %17 : vector<1x128xf32> to vector<64x128xf32>
    %19 = arith.mulf %16, %18 : vector<64x128xf32>
    %c0_7 = arith.constant 0 : index
    %c0_8 = arith.constant 0 : index
    %20 = vector.load %arg3[%c0_7, %c0_8] : memref<1x128xf32, #tpu.memory_space<vmem>>, vector<1x128xf32>
    %21 = vector.broadcast %20 : vector<1x128xf32> to vector<64x128xf32>
    %22 = arith.addf %19, %21 : vector<64x128xf32>
    %23 = arith.truncf %22 : vector<64x128xf32> to vector<64x128xbf16>
    %c0_9 = arith.constant 0 : index
    %c0_10 = arith.constant 0 : index
    %24 = vector.load %arg4[%c0_9, %c0_10] : memref<128x256xbf16, #tpu.memory_space<vmem>>, vector<128x256xbf16>
    %cst_11 = arith.constant dense<0.000000e+00> : vector<64x256xf32>
    %25 = tpu.matmul %23, %24, %cst_11 {dimension_numbers = #tpu.dot_dimension_numbers<[1], [0], [0], [1], [0, 0, 1, 1], [], []>} : vector<64x128xbf16>, vector<128x256xbf16>, vector<64x256xf32> -> vector<64x256xf32>
    %c0_12 = arith.constant 0 : index
    %c0_13 = arith.constant 0 : index
    %26 = vector.load %arg5[%c0_12, %c0_13] : memref<1x256xf32, #tpu.memory_space<vmem>>, vector<1x256xf32>
    %27 = vector.broadcast %26 : vector<1x256xf32> to vector<64x256xf32>
    %28 = arith.addf %25, %27 : vector<64x256xf32>
    %29 = arith.mulf %28, %28 : vector<64x256xf32>
    %30 = arith.mulf %28, %29 : vector<64x256xf32>
    %cst_14 = arith.constant 4.471500e-02 : f32
    %31 = vector.broadcast %cst_14 : f32 to vector<64x256xf32>
    %32 = arith.mulf %31, %30 : vector<64x256xf32>
    %33 = arith.addf %28, %32 : vector<64x256xf32>
    %cst_15 = arith.constant 0.797884583 : f32
    %34 = vector.broadcast %cst_15 : f32 to vector<64x256xf32>
    %35 = arith.mulf %34, %33 : vector<64x256xf32>
    %36 = math.tanh %35 : vector<64x256xf32>
    %cst_16 = arith.constant 1.000000e+00 : f32
    %37 = vector.broadcast %cst_16 : f32 to vector<64x256xf32>
    %38 = arith.addf %37, %36 : vector<64x256xf32>
    %cst_17 = arith.constant 5.000000e-01 : f32
    %39 = vector.broadcast %cst_17 : f32 to vector<64x256xf32>
    %40 = arith.mulf %39, %38 : vector<64x256xf32>
    %41 = arith.mulf %28, %40 : vector<64x256xf32>
    %42 = arith.truncf %41 : vector<64x256xf32> to vector<64x256xbf16>
    %c0_18 = arith.constant 0 : index
    %c0_19 = arith.constant 0 : index
    %43 = vector.load %arg6[%c0_18, %c0_19] : memref<256x128xbf16, #tpu.memory_space<vmem>>, vector<256x128xbf16>
    %cst_20 = arith.constant dense<0.000000e+00> : vector<64x128xf32>
    %44 = tpu.matmul %42, %43, %cst_20 {dimension_numbers = #tpu.dot_dimension_numbers<[1], [0], [0], [1], [0, 0, 1, 1], [], []>} : vector<64x256xbf16>, vector<256x128xbf16>, vector<64x128xf32> -> vector<64x128xf32>
    %c0_21 = arith.constant 0 : index
    %c0_22 = arith.constant 0 : index
    %45 = vector.load %arg7[%c0_21, %c0_22] : memref<1x128xf32, #tpu.memory_space<vmem>>, vector<1x128xf32>
    %46 = vector.broadcast %45 : vector<1x128xf32> to vector<64x128xf32>
    %47 = arith.addf %44, %46 : vector<64x128xf32>
    %c0_23 = arith.constant 0 : index
    %c0_24 = arith.constant 0 : index
    %48 = vector.load %arg8[%c0_23, %c0_24] : memref<64x128xf32, #tpu.memory_space<vmem>>, vector<64x128xf32>
    tpu.vector_store %arg8[%c0_23, %c0_24], %47 {strides = array<i32>} : memref<64x128xf32, #tpu.memory_space<vmem>>, vector<64x128xf32>,
    return
  }
  func.func @transform_0(%arg0: i32) -> (i32, i32) {
    %c0_i32 = arith.constant 0 : i32
    %c0_i32_0 = arith.constant 0 : i32
    return %arg0, %c0_i32 : i32, i32
  }
  func.func @transform_1(%arg0: i32) -> (i32, i32) {
    %c0_i32 = arith.constant 0 : i32
    %c0_i32_0 = arith.constant 0 : i32
    %c0_i32_1 = arith.constant 0 : i32
    return %c0_i32, %c0_i32_0 : i32, i32
  }
  func.func @transform_2(%arg0: i32) -> (i32, i32) {
    %c0_i32 = arith.constant 0 : i32
    %c0_i32_0 = arith.constant 0 : i32
    %c0_i32_1 = arith.constant 0 : i32
    return %c0_i32, %c0_i32_0 : i32, i32
  }
  func.func @transform_3(%arg0: i32) -> (i32, i32) {
    %c0_i32 = arith.constant 0 : i32
    %c0_i32_0 = arith.constant 0 : i32
    %c0_i32_1 = arith.constant 0 : i32
    return %c0_i32, %c0_i32_0 : i32, i32
  }
  func.func @transform_4(%arg0: i32) -> (i32, i32) {
    %c0_i32 = arith.constant 0 : i32
    %c0_i32_0 = arith.constant 0 : i32
    %c0_i32_1 = arith.constant 0 : i32
    return %c0_i32, %c0_i32_0 : i32, i32
  }
  func.func @transform_5(%arg0: i32) -> (i32, i32) {
    %c0_i32 = arith.constant 0 : i32
    %c0_i32_0 = arith.constant 0 : i32
    %c0_i32_1 = arith.constant 0 : i32
    return %c0_i32, %c0_i32_0 : i32, i32
  }
  func.func @transform_6(%arg0: i32) -> (i32, i32) {
    %c0_i32 = arith.constant 0 : i32
    %c0_i32_0 = arith.constant 0 : i32
    %c0_i32_1 = arith.constant 0 : i32
    return %c0_i32, %c0_i32_0 : i32, i32
  }
  func.func @transform_7(%arg0: i32) -> (i32, i32) {
    %c0_i32 = arith.constant 0 : i32
    %c0_i32_0 = arith.constant 0 : i32
    return %arg0, %c0_i32 : i32, i32
  }
}

</mosaic_0001>

<bundles_post_ra>
// kernel: tpu_custom_call.1
= control target key start
LH: loop header
LB: loop body
LE: loop exit
PB: predicated region body
PF: predicated region fallthrough
CT: control target
= control target key end

     0   :  { %s2044_s0 = inlined_call_operand.hbm [shape: f32[128,128], index: 0, kind: input, shape index: {}]   ;;  %s2045_s1 = inlined_call_operand.vmem [shape: f32[1,128], index: 1, kind: input, shape index: {}]   ;;  %s2046_s2 = inlined_call_operand.hbm [shape: f32[1,128], index: 2, kind: input, shape index: {}]   ;;  %s2047_s3 = inlined_call_operand.hbm [shape: bf16[128,256], index: 3, kind: input, shape index: {}]   ;;  %s2048_s4 = inlined_call_operand.vmem [shape: f32[1,256], index: 4, kind: input, shape index: {}]   ;;  %s2049_s5 = inlined_call_operand.hbm [shape: bf16[256,128], index: 5, kind: input, shape index: {}]   ;;  %s2050_s6 = inlined_call_operand.vmem [shape: f32[1,128], index: 6, kind: input, shape index: {}]   ;;  %s2051_s7 = inlined_call_operand.hbm [shape: f32[128,128], index: 7, kind: output, shape index: {}]  }
   0x1   :  { %2058 = sst [smem:[#allocation15_spill]] %s2046_s2 }
   0x2   :  { %12 = vsyncpa [#allocation3], 0 }
   0x3   :  { %14 = vsyncpa [#allocation3 + $0x1], 0 }
   0x4   :  { %15 = vsyncpa [#allocation6], 0 }
   0x5   :  { %16 = vsyncpa [#allocation9], 0 }
   0x6   :  { %17 = vsyncpa [#allocation4], 0 }
   0x7   :  { %19 = vsyncpa [#allocation4 + $0x1], 0  ;;  %s1631_s24 = smov 0   ;;  %s1633_s25 = smov 0  }
   0x8   :  { %s1635_s26 = smov 0   ;;  %s1637_s27 = smov 0  }
   0x9 LB: > { %s1652_s28 = sadd.s32 4294967295, %s1577_s27   ;;  %s1130_s29 = sadd.s32 4294967294, %s1577_s27   ;;  %s1577_s27 = sphi %s1637_s27, %s2080_s27   ;;  %s1573_s26 = sphi %s1635_s26, %s2079_s26   ;;  %s1569_s25 = sphi %s1633_s25, %s2078_s25   ;;  %s1565_s24 = sphi %s1631_s24, %s2077_s24  }
   0xa   : > { %p45_p0 = scmp.ne.s32.totalorder %s1569_s25, %s1565_s24  ;;  %p2052_p1 = scmp.eq.s32.totalorder %s1652_s28, 0 }
   0xb   : > { %p195_p2 = scmp.eq.s32.totalorder %s1652_s28, 1  ;;  %p201_p3 = scmp.eq.s32.totalorder %s1130_s29, 1 }
   0xc   : > { %p1661_p4 = por %p2052_p1, %p45_p0  ;;  %p1131_p5 = scmp.ge.s32.totalorder %s1577_s27, 1 }
   0xd   : > { %p1666_p6 = por %p201_p3, %p45_p0  ;;  %p208_p7 = scmp.lt.s32.totalorder %s1577_s27, 3 }
   0xe   : > { %s2059_s30 = scalar_select %p1661_p4, 1, 0 }
   0xf   : > { %s2060_s8 = scalar_select %p1666_p6, 1, 0 }
  0x10   : > { %p1671_p8 = pnand %p1131_p5, %p208_p7  ;;  %s1579_s10 = smov [#allocation5]  }
  0x11   : > { %s224_s11 = sshll.u32 %s1579_s10, 4  ;;  %s1580_s12 = smov [#allocation7]   ;;  %s225_s11 = int_to_ptr.vmem [resolvable:$true] %s224_s11 }
  0x12   : > { %s2061_s9 = scalar_select %p1671_p8, 1, 0 }
  0x13   : > { %p1243_p10 = pneg %p1671_p8  ;;  %s234_s13 = sshll.u32 %s1580_s12, 4  ;;  %s1684_s13 = int_to_ptr.vmem [resolvable:$true] %s234_s13 }
  0x14   : > { %s1581_s15 = smov [#allocation8]   ;;  %s1410_s17 = scalar_lea.vmem %s225_s11, 16 }
  0x15   : > { %p1680_p11 = pnand %p1243_p10, %p2052_p1  ;;  %s250_s16 = sshll.u32 %s1581_s15, 4  ;;  %s251_s16 = int_to_ptr.vmem [resolvable:$true] %s250_s16 }
  0x16   : > { %p1411_p13 = scmp.ne.s32.totalorder %s225_s11, %s1410_s17  ;;  %s1417_s18 = scalar_lea.vmem %s225_s11, 32 }
  0x17   : > { %p1401_p12 = pneg %p1680_p11  ;;  %p1418_p5 = scmp.lt.s32.totalorder %s225_s11, %s225_s11 }
  0x18   : > { %p1419_p7 = scmp.lt.s32.totalorder %s1417_s18, %s1410_s17 }
  0x19   : > { %p1413_p0 = pnand %p1411_p13, %p1401_p12 }
  0x1a   : > { %p1420_p10 = por %p1419_p7, %p1418_p5 }
  0x1b   : > { %p1414_p3 = pneg %p1413_p0 }
  0x1d   : > { %p1421_p9 = pnand %p1420_p10, %p1414_p3 }
  0x1f   : > { %1424 = shalt.err (!%p1421_p9)
}
  0x20   : > { %s2063_s2 = sld [smem:[#allocation15_spill]]  ;;  %s1436_s21 = scalar_lea.vmem %s1684_s13, 2048 }
  0x21   : > { %p1437_p1 = scmp.ne.s32.totalorder %s1684_s13, %s1436_s21  ;;  %p1444_p5 = scmp.lt.s32.totalorder %s1684_s13, %s1684_s13 }
  0x22   : > { %p1445_p3 = scmp.lt.s32.totalorder %s1436_s21, %s1436_s21 }
  0x23   : > { %p1439_p13 = pnand %p1437_p1, %p1401_p12 }
  0x24   : > { %p1446_p9 = por %p1445_p3, %p1444_p5 }
  0x25   : > { %p1440_p0 = pneg %p1439_p13 }
  0x26   : > { %1246 = dma.hbm_to_vmem [thread:$0]  (!%p1680_p11), %s2063_s2, 16, %s225_s11, [#allocation6]  }
  0x27   : > { %p1447_p7 = pnand %p1446_p9, %p1440_p0 }
  0x29   : > { %1450 = shalt.err (!%p1447_p7)
}
  0x2a   : > { %s2053_s22 = smov 128   ;;  %s2054_s23 = smov 8  }
  0x2b   : > { %1249 = dma.hbm_to_vmem [thread:$0]  (!%p1680_p11), %s2047_s3, 2048, %s1684_s13, [#allocation6], %s2053_s22, %s2053_s22, %s2054_s23  }
  0x2c   : > { %s1462_s11 = scalar_lea.vmem %s251_s16, 2048  ;;  %p1470_p0 = scmp.lt.s32.totalorder %s251_s16, %s251_s16 }
  0x2d   : > { %p1463_p1 = scmp.ne.s32.totalorder %s251_s16, %s1462_s11  ;;  %p1471_p5 = scmp.lt.s32.totalorder %s1462_s11, %s1462_s11 }
  0x2f   : > { %p1465_p10 = pnand %p1463_p1, %p1401_p12  ;;  %p1472_p3 = por %p1471_p5, %p1470_p0 }
  0x31   : > { %p1466_p13 = pneg %p1465_p10 }
  0x33   : > { %p1473_p9 = pnand %p1472_p3, %p1466_p13 }
  0x35   : > { %1476 = shalt.err (!%p1473_p9)
}
  0x36   : > { %s1584_s12 = smov 64   ;;  %s1585_s13 = smov 4  }
  0x37   : > { %1252 = dma.hbm_to_vmem [thread:$0]  (!%p1680_p11), %s2049_s5, 2048, %s251_s16, [#allocation9], %s1584_s12, %s1584_s12, %s1585_s13  }
  0x38   : > { %s1721_s18 = sadd.s32 1, %s1577_s27   ;;  %s32_s20 = sadd.s32 1, %s1573_s26 }
  0x39   : > { %s29_s19 = ssub.s32 %s1577_s27, %s1721_s18  ;;  %p39_p7 = scmp.ne.s32.totalorder %s1573_s26, %s1569_s25 }
  0x3a   : > { %p30_p12 = scmp.eq.s32.totalorder %s29_s19, 0  ;;  %p40_p1 = scmp.eq.s32.totalorder %s1577_s27, 0 }
  0x3b   : > { %p1264_p10 = scmp.lt.s32.totalorder %s1577_s27, 2  ;;  %p1735_p0 = por %p195_p2, %p39_p7 }
  0x3c   : > { %s1731_s21 = scalar_select %p30_p12, %s1573_s26, %s32_s20  }
  0x3d   : > { %p41_p13 = por %p40_p1, %p39_p7  ;;  %s267_s14 = sand.u32 1, %s1573_s26  }
  0x3e   : > { %s2064_s29 = scalar_select %p1735_p0, 1, 0 }
  0x3f   : > { %s1185_s10 = sshll.u32 %s1577_s27, 10  ;;  %s1136_s16 = sshll.u32 %s267_s14, 6 }
  0x40   : > { %s1744_s13 = scalar_lea.hbm %s2044_s0, %s1185_s10  ;;  %s271_s15 = scalar_lea.vmem [#allocation2], %s1136_s16 }
  0x41   : > { %s278_s17 = sshll.u32 %s271_s15, 4  ;;  %p1746_p11 = pnand %p1264_p10, %p41_p13  ;;  %s1750_s17 = int_to_ptr.vmem [resolvable:$true] %s278_s17 }
  0x42   : > { %s1752_s20 = scalar_lea.sflag [#allocation3], %s267_s14  ;;  %s1477_s22 = scalar_lea.hbm %s1744_s13, 1024 }
  0x43   : > { %p1478_p2 = scmp.ne.s32.totalorder %s1744_s13, %s1477_s22  ;;  %p1479_p5 = pneg %p1746_p11 }
  0x44   : > { %s1482_s16 = scalar_lea.hbm %s2044_s0, 2048  ;;  %p1483_p12 = scmp.lt.s32.totalorder %s1744_s13, %s2044_s0 }
  0x45   : > { %p1480_p3 = pnand %p1479_p5, %p1478_p2  ;;  %p1484_p7 = scmp.lt.s32.totalorder %s1482_s16, %s1477_s22 }
  0x47   : > { %p1481_p9 = pneg %p1480_p3  ;;  %p1485_p1 = por %p1484_p7, %p1483_p12 }
  0x49   : > { %p1486_p10 = pnand %p1485_p1, %p1481_p9 }
  0x4b   : > { %1489 = shalt.err (!%p1486_p10)
}
  0x4c   : > { %s1490_s14 = scalar_lea.vmem %s1750_s17, 1024  ;;  %s1586_s23 = smov [#allocation2]  }
  0x4d   : > { %p1491_p13 = scmp.ne.s32.totalorder %s1750_s17, %s1490_s14  ;;  %s1495_s2 = sshll.u32 %s1586_s23, 4  ;;  %s1496_s2 = int_to_ptr.vmem [resolvable:$false] %s1495_s2 }
  0x4e   : > { %s1497_s10 = scalar_lea.vmem %s1496_s2, 2048  ;;  %p1498_p3 = scmp.lt.s32.totalorder %s1750_s17, %s1496_s2 }
  0x4f   : > { %p1493_p6 = pnand %p1491_p13, %p1479_p5  ;;  %p1499_p0 = scmp.lt.s32.totalorder %s1497_s10, %s1490_s14 }
  0x51   : > { %p1494_p2 = pneg %p1493_p6  ;;  %p1500_p4 = por %p1499_p0, %p1498_p3 }
  0x53   : > { %p1501_p8 = pnand %p1500_p4, %p1494_p2 }
  0x55   : > { %1504 = shalt.err (!%p1501_p8)
}
  0x56   : > { %s2066_s22 = smov 8   ;;  %s2067_s11 = smov 128  }
  0x57   : > { %1256 = dma.hbm_to_vmem [thread:$0]  (!%p1746_p11), %s1744_s13, 1024, %s1750_s17, %s1752_s20, %s2067_s11, %s2067_s11, %s2066_s22  }
  0x58   : > { %p2068_p6 = scmp.ne.s32.totalorder %s2061_s9, 0 }
  0x59   : > { %s1779_s23 = sand.u32 (!%p2068_p6), 1, %s1569_s25   ;;  %p2069_p4 = scmp.ne.s32.totalorder (!%p2068_p6), %s2059_s30, 0 }
  0x5a   : > { %290 = sbr.rel (%p2068_p6) target bundleno = 892 (0x37c), region = 48  ;;  %s1140_s2 = sshll.u32 (!%p2068_p6), %s1779_s23, 6 }
  0x5b   : > { %s293_s16 = scalar_lea.sflag (!%p2068_p6), [#allocation3], %s1779_s23  ;;  %s296_s19 = scalar_lea.vmem (!%p2068_p6), [#allocation2], %s1140_s2 }
  0x5f   : > { %1548 = dma.done.wait (%p2069_p4), %s293_s16, 1024  }
  0x60   : > { %1550 = vsyncadd (%p2069_p4), %s293_s16, 4294966272  ;;  %p2070_p8 = scmp.eq.s32.totalorder %s1652_s28, 0 }
  0x62   : > { %1552 = dma.done.wait (%p2070_p8), [#allocation6], 2064   ;;  %p2071_p0 = pmov %p2070_p8 }
  0x64   : > { %1554 = vsyncadd (%p2071_p0), [#allocation6], 4294965232  ;;  %p2072_p11 = pmov %p2071_p0 }
  0x65   : > { %p2073_p5 = pmov %p2071_p0 }
  0x66   : > { %1556 = dma.done.wait (%p2072_p11), [#allocation9], 2048  }
  0x67   : > { %1558 = vsyncadd (%p2073_p5), [#allocation9], 4294965248  ;;  %v342_v0 = vld [vmem:[%s296_s19] sm:$0xff]  ;;  %v344_v1 = vld [vmem:[%s296_s19 + $0x10] sm:$0xff]  ;;  %v1587_v55 = vmov 0   ;;  %s1984_s15 = scalar_lea.vmem [#allocation10], %s1140_s2 }
  0x68   : > { %350 = vadd.xlane.f32.xlu0 %v342_v0  ;;  %354 = vadd.xlane.f32.xlu1 %v344_v1  ;;  %v343_v2 = vld [vmem:[%s296_s19 + $0x8] sm:$0xff]  ;;  %v345_v3 = vld [vmem:[%s296_s19 + $0x18] sm:$0xff]  ;;  %v346_v4 = vld [vmem:[%s296_s19 + $0x20] sm:$0xff]  ;;  %s1028_s14 = sshll.u32 %s1984_s15, 4  ;;  %s1186_s10 = sshll.u32 %s1652_s28, 10  ;;  %s1994_s14 = int_to_ptr.vmem [resolvable:$true] %s1028_s14 }
  0x69   : > { %v347_v5 = vld [vmem:[%s296_s19 + $0x28] sm:$0xff]  ;;  %v348_v6 = vld [vmem:[%s296_s19 + $0x30] sm:$0xff]  ;;  %v349_v7 = vld [vmem:[%s296_s19 + $0x38] sm:$0xff]  ;;  %613 = vmatprep.mubr.bf16.mxu0 %v1587_v55  ;;  %s2000_s2 = scalar_lea.hbm %s2051_s7, %s1186_s10  ;;  %s1015_s16 = scalar_lea.sflag [#allocation4], %s1779_s23 }
  0x6a   : > { %v1311_v8 = vld [vmem:[#allocation7 + $0x74] ss:$8 sps:$4 sm:$0xff]   ;;  %v1313_v9 = vld [vmem:[#allocation7 + $0x70] ss:$8 sps:$4 sm:$0xff]   ;;  %v1314_v41 = vld [vmem:[#allocation7 + $0x64] ss:$8 sps:$4 sm:$0xff]  }
  0x6b   : > { %581 = vmatprep.subr.bf16.mxu0 %v1311_v8  ;;  %v1316_v42 = vld [vmem:[#allocation7 + $0x60] ss:$8 sps:$4 sm:$0xff]   ;;  %v1317_v44 = vld [vmem:[#allocation7 + $0x54] ss:$8 sps:$4 sm:$0xff]   ;;  %v1319_v45 = vld [vmem:[#allocation7 + $0x50] ss:$8 sps:$4 sm:$0xff]  }
  0x6c   : > { %352 = vadd.xlane.f32.xlu0 %v343_v2  ;;  %356 = vadd.xlane.f32.xlu1 %v345_v3  ;;  %v1320_v46 = vld [vmem:[#allocation7 + $0x44] ss:$8 sps:$4 sm:$0xff]   ;;  %v1322_v47 = vld [vmem:[#allocation7 + $0x40] ss:$8 sps:$4 sm:$0xff]   ;;  %v1323_v48 = vld [vmem:[#allocation7 + $0x34] ss:$8 sps:$4 sm:$0xff]  }
  0x6d   : > { %582 = vmatpush1.bf16.msra.mxu0 %v1313_v9  ;;  %v1325_v49 = vld [vmem:[#allocation7 + $0x30] ss:$8 sps:$4 sm:$0xff]   ;;  %v1326_v50 = vld [vmem:[#allocation7 + $0x24] ss:$8 sps:$4 sm:$0xff]   ;;  %v1328_v51 = vld [vmem:[#allocation7 + $0x20] ss:$8 sps:$4 sm:$0xff]  }
  0x6e   : > { %583 = vmatprep.subr.bf16.mxu0 %v1314_v41  ;;  %v1329_v52 = vld [vmem:[#allocation7 + $0x14] ss:$8 sps:$4 sm:$0xff]   ;;  %v1331_v53 = vld [vmem:[#allocation7 + $0x10] ss:$8 sps:$4 sm:$0xff]   ;;  %v1332_v54 = vld [vmem:[#allocation7 + $0x4] ss:$8 sps:$4 sm:$0xff]  }
  0x6f   : > { %v1334_v56 = vld [vmem:[#allocation7] ss:$8 sps:$4 sm:$0xff]   ;;  %s1505_s19 = scalar_lea.vmem %s1994_s14, 1024  ;;  %p2074_p12 = scmp.ne.s32.totalorder %s2064_s29, 0 }
  0x70   : > { %358 = vadd.xlane.f32.xlu0 %v346_v4  ;;  %360 = vadd.xlane.f32.xlu1 %v347_v5  ;;  %p1506_p9 = scmp.ne.s32.totalorder %s1994_s14, %s1505_s19  ;;  %s1588_s28 = smov [#allocation10]  }
  0x71   : > { %584 = vmatpush1.bf16.msra.mxu0 %v1316_v42  ;;  %s1509_s30 = sshll.u32 %s1588_s28, 4  ;;  %s1510_s30 = int_to_ptr.vmem [resolvable:$false] %s1509_s30 }
  0x72   : > { %585 = vmatprep.subr.bf16.mxu0 %v1317_v44  ;;  %p1507_p7 = pnand %p1506_p9, %p2074_p12  ;;  %s1511_s9 = scalar_lea.vmem %s1510_s30, 2048 }
  0x73   : > { %p1512_p10 = scmp.lt.s32.totalorder %s1994_s14, %s1510_s30  ;;  %p1513_p13 = scmp.lt.s32.totalorder %s1511_s9, %s1505_s19 }
  0x74   : > { %362 = vadd.xlane.f32.xlu0 %v348_v6  ;;  %364 = vadd.xlane.f32.xlu1 %v349_v7  ;;  %p1508_p1 = pneg %p1507_p7 }
  0x75   : > { %586 = vmatpush1.bf16.msra.mxu0 %v1319_v45  ;;  %p1514_p2 = por %p1513_p13, %p1512_p10 }
  0x76   : > { %587 = vmatprep.subr.bf16.mxu0 %v1320_v46 }
  0x77   : > { %p1515_p3 = pnand %p1514_p2, %p1508_p1 }
  0x79   : > { %588 = vmatpush1.bf16.msra.mxu0 %v1322_v47 }
  0x7a   : > { %589 = vmatprep.subr.bf16.mxu0 %v1323_v48 }
  0x7d   : > { %590 = vmatpush1.bf16.msra.mxu0 %v1325_v49 }
  0x7e   : > { %591 = vmatprep.subr.bf16.mxu0 %v1326_v50 }
  0x81   : > { %592 = vmatpush1.bf16.msra.mxu0 %v1328_v51 }
  0x82   : > { %593 = vmatprep.subr.bf16.mxu0 %v1329_v52 }
  0x85   : > { %594 = vmatpush1.bf16.msra.mxu0 %v1331_v53 }
  0x86   : > { %595 = vmatprep.subr.bf16.mxu0 %v1332_v54 }
  0x89   : > { %596 = vmatpush1.bf16.msra.mxu0 %v1334_v56 }
  0xf1   : > { %v351_v10 = vpop.xlane.xlu0 %350  ;;  %v355_v11 = vpop.xlane.xlu1 %354 }
  0xf2   : > { %v367_v12 = vmul.f32 0.0078125, %v351_v10  ;;  %v369_v13 = vmul.f32 0.0078125, %v355_v11 }
  0xf4   : > { %v1797_v14 = vsub.f32 %v342_v0, %v367_v12  ;;  %v1799_v15 = vsub.f32 %v344_v1, %v369_v13 }
  0xf5   : > { %v353_v16 = vpop.xlane.xlu0 %352  ;;  %v357_v17 = vpop.xlane.xlu1 %356 }
  0xf6   : > { %v368_v18 = vmul.f32 0.0078125, %v353_v16  ;;  %v383_v19 = vmul.f32 %v1797_v14, %v1797_v14  ;;  %v370_v20 = vmul.f32 0.0078125, %v357_v17  ;;  %v385_v23 = vmul.f32 %v1799_v15, %v1799_v15 }
  0xf8   : > { %v1803_v21 = vsub.f32 %v343_v2, %v368_v18  ;;  %391 = vadd.xlane.f32.xlu0 %v383_v19  ;;  %v1805_v22 = vsub.f32 %v345_v3, %v370_v20  ;;  %v1145_v19 = vld [vmem:[%s2045_s1] ss:$0 sm:$0xff] }
  0xf9   : > { %v359_v24 = vpop.xlane.xlu0 %358  ;;  %v361_v25 = vpop.xlane.xlu1 %360 }
  0xfa   : > { %v371_v26 = vmul.f32 0.0078125, %v359_v24  ;;  %v384_v27 = vmul.f32 %v1803_v21, %v1803_v21  ;;  %v372_v28 = vmul.f32 0.0078125, %v361_v25  ;;  %v386_v31 = vmul.f32 %v1805_v22, %v1805_v22 }
  0xfc   : > { %v1811_v29 = vsub.f32 %v346_v4, %v371_v26  ;;  %395 = vadd.xlane.f32.xlu0 %v385_v23  ;;  %393 = vadd.xlane.f32.xlu1 %v384_v27  ;;  %v1813_v30 = vsub.f32 %v347_v5, %v372_v28  ;;  %v1146_v28 = vld [vmem:[#allocation5] ss:$0 sm:$0xff] }
  0xfd   : > { %v363_v32 = vpop.xlane.xlu0 %362  ;;  %v365_v33 = vpop.xlane.xlu1 %364 }
  0xfe   : > { %v373_v34 = vmul.f32 0.0078125, %v363_v32  ;;  %v387_v35 = vmul.f32 %v1811_v29, %v1811_v29  ;;  %v374_v36 = vmul.f32 0.0078125, %v365_v33  ;;  %v388_v39 = vmul.f32 %v1813_v30, %v1813_v30 }
 0x100   : > { %v1819_v37 = vsub.f32 %v348_v6, %v373_v34  ;;  %397 = vadd.xlane.f32.xlu1 %v386_v31  ;;  %399 = vadd.xlane.f32.xlu0 %v387_v35  ;;  %v1821_v38 = vsub.f32 %v349_v7, %v374_v36 }
 0x102   : > { %v389_v40 = vmul.f32 %v1819_v37, %v1819_v37  ;;  %v390_v43 = vmul.f32 %v1821_v38, %v1821_v38 }
 0x104   : > { %401 = vadd.xlane.f32.xlu1 %v388_v39  ;;  %403 = vadd.xlane.f32.xlu0 %v389_v40 }
 0x108   : > { %405 = vadd.xlane.f32.xlu1 %v390_v43 }
 0x181   : > { %v392_v57 = vpop.xlane.xlu0 %391 }
 0x182   : > { %v407_v58 = vmul.f32 0.0078125, %v392_v57 }
 0x184   : > { %v415_v59 = vadd.f32 1e-05, %v407_v58  ;;  %v1335_v58 = vld [vmem:[#allocation8 + $0x78] sm:$0xff]  }
 0x185   : > { %v394_v60 = vpop.xlane.xlu1 %393  ;;  %v396_v61 = vpop.xlane.xlu0 %395  ;;  %1187 = vmatprep.subr.bf16.mxu1 %v1335_v58 }
 0x186   : > { %1351 = vrsqrt.f32 %v415_v59  ;;  %v408_v62 = vmul.f32 0.0078125, %v394_v60  ;;  %v409_v63 = vmul.f32 0.0078125, %v396_v61  ;;  %v1336_v59 = vld [vmem:[#allocation8 + $0x38] sm:$0xff]   ;;  %v1337_v60 = vld [vmem:[#allocation8 + $0x70] sm:$0xff]  }
 0x187   : > { %1188 = vmatpush3.bf16.msra.mxu1 %v1336_v59  ;;  %v1338_v61 = vld [vmem:[#allocation8 + $0x30] sm:$0xff]  }
 0x188   : > { %v416_v0 = vadd.f32 1e-05, %v408_v62  ;;  %v417_v1 = vadd.f32 1e-05, %v409_v63  ;;  %1189 = vmatprep.subr.bf16.mxu1 %v1337_v60  ;;  %v1341_v62 = vld [vmem:[#allocation8 + $0x60] sm:$0xff]  }
 0x189   : > { %v398_v2 = vpop.xlane.xlu1 %397  ;;  %v400_v3 = vpop.xlane.xlu0 %399  ;;  %v1342_v63 = vld [vmem:[#allocation8 + $0x20] sm:$0xff]  }
 0x18a   : > { %1353 = vrsqrt.f32 %v416_v0  ;;  %v410_v4 = vmul.f32 0.0078125, %v398_v2  ;;  %v411_v6 = vmul.f32 0.0078125, %v400_v3  ;;  %v1344_v0 = vld [vmem:[#allocation8 + $0x18] sm:$0xff]   ;;  %v1346_v2 = vld [vmem:[#allocation8 + $0x10] sm:$0xff]   ;;  %v1347_v3 = vld [vmem:[#allocation8 + $0x48] sm:$0xff]  }
 0x18b   : > { %1355 = vrsqrt.f32 %v417_v1  ;;  %1190 = vmatpush3.bf16.msra.mxu1 %v1338_v61  ;;  %v1345_v1 = vld [vmem:[#allocation8 + $0x50] sm:$0xff]  }
 0x18c   : > { %v418_v5 = vadd.f32 1e-05, %v410_v4  ;;  %v419_v9 = vadd.f32 1e-05, %v411_v6  ;;  %v1348_v4 = vld [vmem:[#allocation8 + $0x8] sm:$0xff]   ;;  %v1350_v6 = vld [vmem:[#allocation8] sm:$0xff]  }
 0x18d   : > { %v402_v7 = vpop.xlane.xlu1 %401  ;;  %v404_v11 = vpop.xlane.xlu0 %403 }
 0x18e   : > { %1357 = vrsqrt.f32 %v418_v5  ;;  %v412_v8 = vmul.f32 0.0078125, %v402_v7  ;;  %v413_v17 = vmul.f32 0.0078125, %v404_v11  ;;  %v1349_v5 = vld [vmem:[#allocation8 + $0x40] sm:$0xff]   ;;  %v491_v7 = vlaneseq }
 0x190   : > { %v420_v10 = vadd.f32 1e-05, %v412_v8  ;;  %v421_v24 = vadd.f32 1e-05, %v413_v17  ;;  %v492_v8 = vshrl.u32 %v491_v7, 7 }
 0x191   : > { %v406_v12 = vpop.xlane.xlu1 %405 }
 0x192   : > { %1359 = vrsqrt.f32 %v420_v10  ;;  %v414_v13 = vmul.f32 0.0078125, %v406_v12  ;;  %v489_v10 = vld [vmem:[%s2048_s4] sm:$0x3]  ;;  %v497_v11 = vsub.s32 1, %v492_v8 }
 0x193   : > { %v1352_v16 = vpop.eup %1351  ;;  %1361 = vrsqrt.f32 %v419_v9  ;;  %v493_v9 = vsub.s32 0, %v492_v8 }
 0x194   : > { %v431_v18 = vmul.f32 %v1352_v16, %v1797_v14  ;;  %v422_v20 = vadd.f32 1e-05, %v414_v13  ;;  %v1849_v13 = vrot.slane %v489_v10, %v497_v11 }
 0x195   : > { %v1847_v12 = vrot.slane %v489_v10, %v493_v9 }
 0x196   : > { %v446_v26 = vmul.f32 %v1145_v19, %v431_v18  ;;  %1363 = vrsqrt.f32 %v422_v20 }
 0x197   : > { %v1354_v23 = vpop.eup %1353  ;;  %1365 = vrsqrt.f32 %v421_v24 }
 0x198   : > { %v432_v25 = vmul.f32 %v1354_v23, %v1803_v21  ;;  %v1356_v27 = vpop.eup %1355  ;;  %v461_v33 = vadd.f32 %v1146_v28, %v446_v26 }
 0x199   : > { %v433_v14 = vmul.f32 %v1356_v27, %v1799_v15 }
 0x19a   : > { %v447_v31 = vmul.f32 %v1145_v19, %v432_v25 }
 0x19b   : > { %v1358_v32 = vpop.eup %1357  ;;  %v448_v41 = vmul.f32 %v1145_v19, %v433_v14 }
 0x19c   : > { %v462_v34 = vadd.f32 %v1146_v28, %v447_v31  ;;  %v434_v35 = vmul.f32 %v1358_v32, %v1805_v22 }
 0x19d   : > { %v463_v44 = vadd.f32 %v1146_v28, %v448_v41 }
 0x19e   : > { %v469_v36 = vpack.c.bf16 %v462_v34, %v461_v33  ;;  %v449_v39 = vmul.f32 %v1145_v19, %v434_v35 }
 0x19f   : > { %v1360_v40 = vpop.eup %1359 }
 0x1a0   : > { %614 = vmatmul.mubr.bf16.vlgmr.msra.gmra.mxu0 %v469_v36  ;;  %v1362_v42 = vpop.eup %1361  ;;  %v464_v21 = vadd.f32 %v1146_v28, %v449_v39  ;;  %v436_v43 = vmul.f32 %v1360_v40, %v1813_v30 }
 0x1a1   : > { %623 = vmatprep.mubr.bf16.mxu0 %v1587_v55  ;;  %v435_v45 = vmul.f32 %v1362_v42, %v1811_v29 }
 0x1a2   : > { %v470_v46 = vpack.c.bf16 %v464_v21, %v463_v44  ;;  %v451_v47 = vmul.f32 %v1145_v19, %v436_v43 }
 0x1a3   : > { %v1364_v48 = vpop.eup %1363  ;;  %v450_v22 = vmul.f32 %v1145_v19, %v435_v45 }
 0x1a4   : > { %v1366_v15 = vpop.eup %1365  ;;  %v466_v49 = vadd.f32 %v1146_v28, %v451_v47  ;;  %v438_v50 = vmul.f32 %v1364_v48, %v1821_v38  ;;  %v1339_v38 = vld [vmem:[#allocation8 + $0x68] sm:$0xff]  }
 0x1a5   : > { %v465_v51 = vadd.f32 %v1146_v28, %v450_v22  ;;  %v437_v52 = vmul.f32 %v1366_v15, %v1819_v37  ;;  %v1340_v37 = vld [vmem:[#allocation8 + $0x28] sm:$0xff]   ;;  %1191 = vmatprep.subr.bf16.mxu1 %v1339_v38 }
 0x1a6   : > { %v453_v54 = vmul.f32 %v1145_v19, %v438_v50  ;;  %1192 = vmatpush3.bf16.msra.mxu1 %v1340_v37 }
 0x1a7   : > { %v471_v53 = vpack.c.bf16 %v466_v49, %v465_v51  ;;  %v452_v30 = vmul.f32 %v1145_v19, %v437_v52  ;;  %1193 = vmatprep.subr.bf16.mxu1 %v1341_v62 }
 0x1a8   : > { %624 = vmatmul.mubr.bf16.gmra.mxu0 %v470_v46  ;;  %v468_v29 = vadd.f32 %v1146_v28, %v453_v54 }
 0x1a9   : > { %633 = vmatprep.mubr.bf16.mxu0 %v1587_v55  ;;  %v467_v56 = vadd.f32 %v1146_v28, %v452_v30 }
 0x1aa   : > { %1194 = vmatpush3.bf16.msra.mxu1 %v1342_v63 }
 0x1ab   : > { %v472_v57 = vpack.c.bf16 %v468_v29, %v467_v56 }
 0x1b0   : > { %634 = vmatmul.mubr.bf16.gmra.mxu0 %v471_v53 }
 0x1b1   : > { %643 = vmatprep.mubr.bf16.mxu0 %v1587_v55  ;;  %v1343_v55 = vld [vmem:[#allocation8 + $0x58] sm:$0xff]  }
 0x1b2   : > { %1195 = vmatprep.subr.bf16.mxu1 %v1343_v55 }
 0x1b3   : > { %1196 = vmatpush3.bf16.msra.mxu1 %v1344_v0 }
 0x1b4   : > { %1197 = vmatprep.subr.bf16.mxu1 %v1345_v1 }
 0x1b7   : > { %1198 = vmatpush3.bf16.msra.mxu1 %v1346_v2 }
 0x1b8   : > { %644 = vmatmul.mubr.bf16.gmra.mxu0 %v472_v57  ;;  %1199 = vmatprep.subr.bf16.mxu1 %v1347_v3 }
 0x1bb   : > { %1200 = vmatpush3.bf16.msra.mxu1 %v1348_v4 }
 0x1bc   : > { %1201 = vmatprep.subr.bf16.mxu1 %v1349_v5 }
 0x1bf   : > { %1202 = vmatpush3.bf16.msra.mxu1 %v1350_v6 }
 0x260   : > { %v615_v16 = vpop.f32.mrf.mxu0 }
 0x261   : > { %v1852_v17 = vadd.f32 %v615_v16, %v1847_v12 }
 0x262   : > { %v617_v18 = vpop.f32.mrf.mxu0 }
 0x263   : > { %v654_v19 = vmul.f32 %v1852_v17, %v1852_v17  ;;  %v1857_v20 = vadd.f32 %v617_v18, %v1849_v13 }
 0x264   : > { %v619_v23 = vpop.f32.mrf.mxu0 }
 0x265   : > { %v670_v24 = vmul.f32 %v654_v19, %v1852_v17  ;;  %v655_v25 = vmul.f32 %v1857_v20, %v1857_v20  ;;  %v1863_v26 = vadd.f32 %v619_v23, %v1847_v12 }
 0x266   : > { %v621_v27 = vpop.f32.mrf.mxu0 }
 0x267   : > { %v686_v28 = vmul.f32 0.044715, %v670_v24  ;;  %v671_v31 = vmul.f32 %v655_v25, %v1857_v20  ;;  %v656_v32 = vmul.f32 %v1863_v26, %v1863_v26  ;;  %v1869_v33 = vadd.f32 %v621_v27, %v1849_v13 }
 0x268   : > { %v625_v34 = vpop.f32.mrf.mxu0 }
 0x269   : > { %v702_v14 = vadd.f32 %v686_v28, %v1852_v17  ;;  %v687_v35 = vmul.f32 0.044715, %v671_v31  ;;  %v672_v36 = vmul.f32 %v656_v32, %v1863_v26  ;;  %v657_v39 = vmul.f32 %v1869_v33, %v1869_v33 }
 0x26a   : > { %v1876_v40 = vadd.f32 %v625_v34, %v1847_v12  ;;  %v627_v41 = vpop.f32.mrf.mxu0 }
 0x26b   : > { %v718_v42 = vmul.f32 0.7978846, %v702_v14  ;;  %v703_v21 = vadd.f32 %v687_v35, %v1857_v20  ;;  %v688_v43 = vmul.f32 0.044715, %v672_v36  ;;  %v673_v44 = vmul.f32 %v657_v39, %v1869_v33 }
 0x26c   : > { %v658_v45 = vmul.f32 %v1876_v40, %v1876_v40  ;;  %v1883_v46 = vadd.f32 %v627_v41, %v1849_v13  ;;  %v629_v47 = vpop.f32.mrf.mxu0 }
 0x26d   : > { %1367 = vtanh.f32 %v718_v42  ;;  %v704_v48 = vadd.f32 %v688_v43, %v1863_v26  ;;  %v689_v15 = vmul.f32 0.044715, %v673_v44  ;;  %v1887_v22 = vadd.f32 %v629_v47, %v1847_v12 }
 0x26e   : > { %v674_v49 = vmul.f32 %v658_v45, %v1876_v40  ;;  %v659_v50 = vmul.f32 %v1883_v46, %v1883_v46  ;;  %v631_v51 = vpop.f32.mrf.mxu0  ;;  %v719_v52 = vmul.f32 0.7978846, %v703_v21 }
 0x26f   : > { %v720_v53 = vmul.f32 0.7978846, %v704_v48  ;;  %v705_v54 = vadd.f32 %v689_v15, %v1869_v33  ;;  %v660_v30 = vmul.f32 %v1887_v22, %v1887_v22  ;;  %v1896_v29 = vadd.f32 %v631_v51, %v1849_v13 }
 0x270   : > { %v690_v56 = vmul.f32 0.044715, %v674_v49  ;;  %v675_v57 = vmul.f32 %v659_v50, %v1883_v46  ;;  %v635_v58 = vpop.f32.mrf.mxu0  ;;  %1369 = vtanh.f32 %v719_v52 }
 0x271   : > { %1371 = vtanh.f32 %v720_v53  ;;  %v676_v59 = vmul.f32 %v660_v30, %v1887_v22  ;;  %v661_v60 = vmul.f32 %v1896_v29, %v1896_v29  ;;  %v1903_v61 = vadd.f32 %v635_v58, %v1847_v12 }
 0x272   : > { %v706_v38 = vadd.f32 %v690_v56, %v1876_v40  ;;  %v691_v37 = vmul.f32 0.044715, %v675_v57  ;;  %v637_v62 = vpop.f32.mrf.mxu0  ;;  %v721_v63 = vmul.f32 0.7978846, %v705_v54 }
 0x273   : > { %v692_v55 = vmul.f32 0.044715, %v676_v59  ;;  %v677_v0 = vmul.f32 %v661_v60, %v1896_v29  ;;  %v662_v1 = vmul.f32 %v1903_v61, %v1903_v61  ;;  %v1910_v2 = vadd.f32 %v637_v62, %v1849_v13 }
 0x274   : > { %v722_v3 = vmul.f32 0.7978846, %v706_v38  ;;  %v707_v4 = vadd.f32 %v691_v37, %v1883_v46  ;;  %v639_v5 = vpop.f32.mrf.mxu0  ;;  %1373 = vtanh.f32 %v721_v63 }
 0x275   : > { %v708_v6 = vadd.f32 %v692_v55, %v1887_v22  ;;  %v693_v7 = vmul.f32 0.044715, %v677_v0  ;;  %v678_v8 = vmul.f32 %v662_v1, %v1903_v61  ;;  %v663_v9 = vmul.f32 %v1910_v2, %v1910_v2 }
 0x276   : > { %1375 = vtanh.f32 %v722_v3  ;;  %v723_v10 = vmul.f32 0.7978846, %v707_v4  ;;  %v1918_v11 = vadd.f32 %v639_v5, %v1847_v12  ;;  %v641_v16 = vpop.f32.mrf.mxu0 }
 0x277   : > { %v724_v18 = vmul.f32 0.7978846, %v708_v6  ;;  %v709_v19 = vadd.f32 %v693_v7, %v1896_v29  ;;  %v694_v23 = vmul.f32 0.044715, %v678_v8  ;;  %v679_v24 = vmul.f32 %v663_v9, %v1910_v2 }
 0x278   : > { %1377 = vtanh.f32 %v723_v10  ;;  %v664_v25 = vmul.f32 %v1918_v11, %v1918_v11  ;;  %v1925_v27 = vadd.f32 %v641_v16, %v1849_v13  ;;  %v645_v28 = vpop.f32.mrf.mxu0 }
 0x279   : > { %1379 = vtanh.f32 %v724_v18  ;;  %v725_v31 = vmul.f32 0.7978846, %v709_v19  ;;  %v710_v32 = vadd.f32 %v694_v23, %v1903_v61  ;;  %v695_v34 = vmul.f32 0.044715, %v679_v24 }
 0x27a   : > { %v1368_v14 = vpop.eup %1367  ;;  %v680_v35 = vmul.f32 %v664_v25, %v1918_v11  ;;  %v665_v36 = vmul.f32 %v1925_v27, %v1925_v27  ;;  %v1932_v39 = vadd.f32 %v645_v28, %v1847_v12  ;;  %v647_v41 = vpop.f32.mrf.mxu0 }
 0x27b   : > { %1381 = vtanh.f32 %v725_v31  ;;  %v726_v42 = vmul.f32 0.7978846, %v710_v32  ;;  %v711_v21 = vadd.f32 %v695_v34, %v1910_v2  ;;  %v1936_v43 = vadd.f32 %v647_v41, %v1849_v13 }
 0x27c   : > { %v696_v44 = vmul.f32 0.044715, %v680_v35  ;;  %v681_v45 = vmul.f32 %v665_v36, %v1925_v27  ;;  %v666_v47 = vmul.f32 %v1932_v39, %v1932_v39  ;;  %v649_v48 = vpop.f32.mrf.mxu0  ;;  %v750_v15 = vadd.f32 1.0, %v1368_v14 }
 0x27d   : > { %v1370_v49 = vpop.eup %1369  ;;  %1383 = vtanh.f32 %v726_v42  ;;  %v727_v50 = vmul.f32 0.7978846, %v711_v21  ;;  %v667_v51 = vmul.f32 %v1936_v43, %v1936_v43  ;;  %v1944_v52 = vadd.f32 %v649_v48, %v1847_v12 }
 0x27e   : > { %v1372_v53 = vpop.eup %1371  ;;  %v712_v54 = vadd.f32 %v696_v44, %v1918_v11  ;;  %v697_v30 = vmul.f32 0.044715, %v681_v45  ;;  %v682_v56 = vmul.f32 %v666_v47, %v1932_v39  ;;  %v651_v57 = vpop.f32.mrf.mxu0  ;;  %v751_v58 = vadd.f32 1.0, %v1370_v49 }
 0x27f   : > { %1385 = vtanh.f32 %v727_v50  ;;  %v683_v59 = vmul.f32 %v667_v51, %v1936_v43  ;;  %v668_v60 = vmul.f32 %v1944_v52, %v1944_v52  ;;  %v1952_v38 = vadd.f32 %v651_v57, %v1849_v13 }
 0x280   : > { %v728_v37 = vmul.f32 0.7978846, %v712_v54  ;;  %v713_v12 = vadd.f32 %v697_v30, %v1925_v27  ;;  %v698_v62 = vmul.f32 0.044715, %v682_v56  ;;  %v767_v63 = vmul.f32 0.5, %v751_v58 }
 0x281   : > { %v1374_v55 = vpop.eup %1373  ;;  %v699_v0 = vmul.f32 0.044715, %v683_v59  ;;  %v684_v1 = vmul.f32 %v668_v60, %v1944_v52  ;;  %v669_v3 = vmul.f32 %v1952_v38, %v1952_v38  ;;  %v752_v4 = vadd.f32 1.0, %v1372_v53 }
 0x282   : > { %1387 = vtanh.f32 %v728_v37  ;;  %v729_v5 = vmul.f32 0.7978846, %v713_v12  ;;  %v714_v6 = vadd.f32 %v698_v62, %v1932_v39  ;;  %v753_v7 = vadd.f32 1.0, %v1374_v55 }
 0x283   : > { %v1376_v13 = vpop.eup %1375  ;;  %v715_v8 = vadd.f32 %v699_v0, %v1936_v43  ;;  %v700_v9 = vmul.f32 0.044715, %v684_v1  ;;  %v685_v10 = vmul.f32 %v669_v3, %v1952_v38  ;;  %v783_v16 = vmul.f32 %v767_v63, %v1857_v20 }
 0x284   : > { %1389 = vtanh.f32 %v729_v5  ;;  %v730_v18 = vmul.f32 0.7978846, %v714_v6  ;;  %v769_v19 = vmul.f32 0.5, %v753_v7  ;;  %v766_v23 = vmul.f32 0.5, %v750_v15 }
 0x285   : > { %v1378_v24 = vpop.eup %1377  ;;  %v731_v25 = vmul.f32 0.7978846, %v715_v8  ;;  %v716_v28 = vadd.f32 %v700_v9, %v1944_v52  ;;  %v701_v31 = vmul.f32 0.044715, %v685_v10  ;;  %v768_v32 = vmul.f32 0.5, %v752_v4 }
 0x286   : > { %v1380_v34 = vpop.eup %1379  ;;  %1391 = vtanh.f32 %v730_v18  ;;  %v785_v14 = vmul.f32 %v769_v19, %v1869_v33  ;;  %v782_v35 = vmul.f32 %v766_v23, %v1852_v17  ;;  %v755_v36 = vadd.f32 1.0, %v1378_v24 }
 0x287   : > { %1393 = vtanh.f32 %v731_v25  ;;  %v732_v41 = vmul.f32 0.7978846, %v716_v28  ;;  %v717_v20 = vadd.f32 %v701_v31, %v1952_v38  ;;  %v784_v42 = vmul.f32 %v768_v32, %v1863_v26 }
 0x288   : > { %v1382_v21 = vpop.eup %1381  ;;  %v799_v44 = vpack.c.bf16 %v785_v14, %v783_v16  ;;  %v771_v45 = vmul.f32 0.5, %v755_v36  ;;  %v754_v47 = vadd.f32 1.0, %v1376_v13  ;;  %v756_v48 = vadd.f32 1.0, %v1380_v34  ;;  %v1163_v14 = vld [vmem:[%s2050_s6] ss:$0 sm:$0xff] }
 0x289   : > { %1395 = vtanh.f32 %v732_v41  ;;  %v733_v15 = vmul.f32 0.7978846, %v717_v20  ;;  %v798_v49 = vpack.c.bf16 %v784_v42, %v782_v35  ;;  %v757_v50 = vadd.f32 1.0, %v1382_v21 }
 0x28a   : > { %v1384_v51 = vpop.eup %1383  ;;  %973 = vmatprep.mubr.bf16.mxu1 %v799_v44  ;;  %v772_v33 = vmul.f32 0.5, %v756_v48  ;;  %v770_v53 = vmul.f32 0.5, %v754_v47  ;;  %v787_v30 = vmul.f32 %v771_v45, %v1883_v46 }
 0x28b   : > { %1397 = vtanh.f32 %v733_v15  ;;  %974 = vmatmul.mubr.bf16.vlgmr.msra.gmra.mxu1 %v798_v49  ;;  %v773_v17 = vmul.f32 0.5, %v757_v50  ;;  %v758_v37 = vadd.f32 1.0, %v1384_v51 }
 0x28c   : > { %v1386_v54 = vpop.eup %1385  ;;  %v788_v56 = vmul.f32 %v772_v33, %v1887_v22  ;;  %v786_v60 = vmul.f32 %v770_v53, %v1876_v40 }
 0x28d   : > { %v789_v26 = vmul.f32 %v773_v17, %v1896_v29  ;;  %v759_v57 = vadd.f32 1.0, %v1386_v54  ;;  %v774_v46 = vmul.f32 0.5, %v758_v37 }
 0x28e   : > { %v800_v63 = vpack.c.bf16 %v788_v56, %v786_v60 }
 0x28f   : > { %v1388_v58 = vpop.eup %1387  ;;  %v801_v59 = vpack.c.bf16 %v789_v26, %v787_v30  ;;  %v775_v0 = vmul.f32 0.5, %v759_v57  ;;  %v790_v13 = vmul.f32 %v774_v46, %v1903_v61 }
 0x290   : > { %v760_v12 = vadd.f32 1.0, %v1388_v58 }
 0x291   : > { %v1390_v62 = vpop.eup %1389  ;;  %981 = vmatprep.mubr.bf16.mxu1 %v801_v59  ;;  %v791_v7 = vmul.f32 %v775_v0, %v1910_v2 }
 0x292   : > { %v761_v55 = vadd.f32 1.0, %v1390_v62  ;;  %v776_v1 = vmul.f32 0.5, %v760_v12 }
 0x293   : > { %v1392_v3 = vpop.eup %1391  ;;  %982 = vmatmul.mubr.bf16.gmra.mxu1 %v800_v63 }
 0x294   : > { %v1394_v4 = vpop.eup %1393  ;;  %v777_v29 = vmul.f32 0.5, %v761_v55  ;;  %v792_v22 = vmul.f32 %v776_v1, %v1918_v11  ;;  %v762_v8 = vadd.f32 1.0, %v1392_v3 }
 0x295   : > { %v763_v5 = vadd.f32 1.0, %v1394_v4 }
 0x296   : > { %v1396_v6 = vpop.eup %1395  ;;  %v793_v40 = vmul.f32 %v777_v29, %v1925_v27  ;;  %v802_v18 = vpack.c.bf16 %v792_v22, %v790_v13  ;;  %v778_v11 = vmul.f32 0.5, %v762_v8 }
 0x297   : > { %v764_v9 = vadd.f32 1.0, %v1396_v6  ;;  %v779_v23 = vmul.f32 0.5, %v763_v5 }
 0x298   : > { %v1398_v10 = vpop.eup %1397  ;;  %v803_v16 = vpack.c.bf16 %v793_v40, %v791_v7  ;;  %v794_v31 = vmul.f32 %v778_v11, %v1932_v39 }
 0x299   : > { %v765_v19 = vadd.f32 1.0, %v1398_v10  ;;  %v780_v24 = vmul.f32 0.5, %v764_v9  ;;  %v795_v28 = vmul.f32 %v779_v23, %v1936_v43 }
 0x29a   : > { %989 = vmatprep.mubr.bf16.mxu1 %v803_v16 }
 0x29b   : > { %990 = vmatmul.mubr.bf16.gmra.mxu1 %v802_v18  ;;  %v781_v25 = vmul.f32 0.5, %v765_v19  ;;  %v796_v27 = vmul.f32 %v780_v24, %v1944_v52 }
 0x29d   : > { %v797_v2 = vmul.f32 %v781_v25, %v1952_v38  ;;  %v804_v32 = vpack.c.bf16 %v796_v27, %v794_v31 }
 0x29f   : > { %v805_v61 = vpack.c.bf16 %v797_v2, %v795_v28 }
 0x2a1   : > { %997 = vmatprep.mubr.bf16.mxu1 %v805_v61 }
 0x2a3   : > { %998 = vmatmul.mubr.bf16.gmra.mxu1 %v804_v32 }
 0x34b   : > { %v1203_v34 = vpop.f32.mrf.mxu1 }
 0x34d   : > { %v1204_v35 = vpop.f32.mrf.mxu1 }
 0x34e   : > { %v1205_v36 = vadd.f32 %v1204_v35, %v1203_v34 }
 0x34f   : > { %v1206_v41 = vpop.f32.mrf.mxu1 }
 0x350   : > { %v976_v20 = vadd.f32 %v1205_v36, %v1163_v14 }
 0x351   : > { %v1207_v43 = vpop.f32.mrf.mxu1 }
 0x352   : > { %1006 = vst [vmem:[%s1984_s15] sm:$0xff] %v976_v20  ;;  %v1208_v39 = vadd.f32 %v1207_v43, %v1206_v41 }
 0x353   : > { %v1209_v52 = vpop.f32.mrf.mxu1 }
 0x354   : > { %v979_v38 = vadd.f32 %v1208_v39, %v1163_v14 }
 0x355   : > { %v1210_v42 = vpop.f32.mrf.mxu1 }
 0x356   : > { %1007 = vst [vmem:[%s1984_s15 + $0x8] sm:$0xff] %v979_v38  ;;  %v1211_v21 = vadd.f32 %v1210_v42, %v1209_v52 }
 0x357   : > { %v1212_v44 = vpop.f32.mrf.mxu1 }
 0x358   : > { %v984_v45 = vadd.f32 %v1211_v21, %v1163_v14 }
 0x359   : > { %v1213_v47 = vpop.f32.mrf.mxu1 }
 0x35a   : > { %1008 = vst [vmem:[%s1984_s15 + $0x10] sm:$0xff] %v984_v45  ;;  %v1214_v48 = vadd.f32 %v1213_v47, %v1212_v44 }
 0x35b   : > { %v1215_v15 = vpop.f32.mrf.mxu1 }
 0x35c   : > { %v987_v49 = vadd.f32 %v1214_v48, %v1163_v14 }
 0x35d   : > { %v1216_v50 = vpop.f32.mrf.mxu1 }
 0x35e   : > { %1009 = vst [vmem:[%s1984_s15 + $0x18] sm:$0xff] %v987_v49  ;;  %v1217_v51 = vadd.f32 %v1216_v50, %v1215_v15 }
 0x35f   : > { %v1218_v33 = vpop.f32.mrf.mxu1 }
 0x360   : > { %v992_v17 = vadd.f32 %v1217_v51, %v1163_v14 }
 0x361   : > { %v1219_v53 = vpop.f32.mrf.mxu1 }
 0x362   : > { %1010 = vst [vmem:[%s1984_s15 + $0x20] sm:$0xff] %v992_v17  ;;  %v1220_v54 = vadd.f32 %v1219_v53, %v1218_v33 }
 0x363   : > { %v1221_v30 = vpop.f32.mrf.mxu1 }
 0x364   : > { %v995_v26 = vadd.f32 %v1220_v54, %v1163_v14 }
 0x365   : > { %v1222_v56 = vpop.f32.mrf.mxu1 }
 0x366   : > { %1011 = vst [vmem:[%s1984_s15 + $0x28] sm:$0xff] %v995_v26  ;;  %v1223_v57 = vadd.f32 %v1222_v56, %v1221_v30 }
 0x367   : > { %v1224_v58 = vpop.f32.mrf.mxu1 }
 0x368   : > { %v1000_v59 = vadd.f32 %v1223_v57, %v1163_v14 }
 0x369   : > { %v1225_v60 = vpop.f32.mrf.mxu1 }
 0x36a   : > { %1012 = vst [vmem:[%s1984_s15 + $0x30] sm:$0xff] %v1000_v59  ;;  %v1226_v37 = vadd.f32 %v1225_v60, %v1224_v58 }
 0x36c   : > { %v1003_v12 = vadd.f32 %v1226_v37, %v1163_v14 }
 0x36e   : > { %1013 = vst [vmem:[%s1984_s15 + $0x38] sm:$0xff] %v1003_v12 }
 0x36f   : > { %1518 = shalt.err (!%p1515_p3)
}
 0x370   : > { %s1519_s13 = scalar_lea.hbm %s2000_s2, 1024  ;;  %s1523_s12 = scalar_lea.hbm %s2051_s7, 2048 }
 0x371   : > { %p1520_p6 = scmp.ne.s32.totalorder %s2000_s2, %s1519_s13  ;;  %p1524_p0 = scmp.lt.s32.totalorder %s2000_s2, %s2051_s7 }
 0x372   : > { %p1525_p11 = scmp.lt.s32.totalorder %s1523_s12, %s1519_s13 }
 0x373   : > { %p1521_p4 = pnand %p1520_p6, %p2074_p12 }
 0x374   : > { %p1526_p5 = por %p1525_p11, %p1524_p0 }
 0x375   : > { %p1522_p8 = pneg %p1521_p4 }
 0x377   : > { %p1527_p9 = pnand %p1526_p5, %p1522_p8 }
 0x379   : > { %1530 = shalt.err (!%p1527_p9)
}
 0x37a   : > { %s1589_s22 = smov 128   ;;  %s1590_s11 = smov 8  }
 0x37b   : > { %1241 = dma.vmem_to_hbm [thread:$0]  (%p2074_p12), %s1994_s14, 1024, %s2000_s2, %s1015_s16, %s1589_s22, %s1589_s22, %s1590_s11  }
 0x37c PF: > { %s1043_s19 = sand.u32 1, %s1565_s24   ;;  %p2075_p7 = scmp.ne.s32.totalorder %s2060_s8, 0 }
 0x37d   : > { %p2076_p1 = scmp.ge.s32.totalorder %s1577_s27, 2  ;;  %s1044_s28 = scalar_lea.sflag [#allocation4], %s1043_s19 }
 0x37f   : > { %p1258_p10 = pnand %p2076_p1, %p2075_p7 }
 0x381   : > { %p1259_p13 = pneg %p1258_p10 }
 0x383   : > { %1560 = dma.done.wait (%p1259_p13), %s1044_s28, 1024  }
 0x384   : > { %1562 = vsyncadd (%p1259_p13), %s1044_s28, 4294966272  ;;  %p22_p2 = scmp.ge.s32.totalorder %s1721_s18, 4   ;;  %s2077_s24 = smov %s1569_s25 }
 0x385   : > { %s2078_s25 = smov %s1573_s26  ;;  %s2079_s26 = smov %s1731_s21 }
 0x386   : > { %s2080_s27 = smov %s1721_s18  ;;  %24 = sbr.rel (!%p22_p2) target bundleno = 9 (0x9), region = 105 }
 0x38b   :  { %1049 = vsyncpa [#allocation3], 1 }
 0x38c   :  { %1051 = vsyncpa [#allocation3 + $0x1], 1 }
 0x38d   :  { %1052 = vsyncpa [#allocation6], 1 }
 0x38e   :  { %1053 = vsyncpa [#allocation9], 1 }
 0x38f   :  { %1054 = vsyncpa [#allocation4], 1 }
 0x390   :  { %1056 = vsyncpa [#allocation4 + $0x1], 1 }

</bundles_post_ra>
